<compile_context>
chip_gen: v7x
topology: tpu7x:2x2x1
jax: 0.10.0
libtpu: 0.0.40
codegen_flags: <defaults>
</compile_context>

<pallas_src>
import jax
import jax.numpy as jnp
from jax.experimental import pallas as pl
from jax.experimental.pallas import tpu as pltpu


def _sae_hook_ln_kernel(rec_ref, x_ref, o_ref):
    """rec_ref: (1, d_in) precomputed delta @ W_dec + b_dec; x_ref/o_ref: (tm, d_in)."""
    d = x_ref.shape[-1]
    x = x_ref[...].astype(jnp.float32)

    # Per-row layer-norm statistics (reduction over the lane dim -> XLU).
    mu = jnp.sum(x, axis=-1, keepdims=True) * (1.0 / d)
    xc = x - mu
    var = jnp.sum(xc * xc, axis=-1, keepdims=True) * (1.0 / (d - 1))  # torch.std: ddof=1
    std = jnp.sqrt(var)

    # (rec*std + mu) + (x - mu)  ==  x + rec*std    (single FMA per element)
    o_ref[...] = (x + rec_ref[...] * std).astype(o_ref.dtype)


def _sae_hook_plain_kernel(rec_ref, x_ref, o_ref):
    # non-'layer_norm' branch of the module: no centering / no ln stats
    o_ref[...] = (x_ref[...].astype(jnp.float32) + rec_ref[...]).astype(o_ref.dtype)


def sae_hook_forward(x, delta, w_dec, b_dec, *,
                     normalize_activations="layer_norm", tm=None):
    """x: (..., d_in) activations; delta: (d_sae,); w_dec: (d_sae, d_in); b_dec: (d_in,)."""
    orig_shape = x.shape
    d_in = orig_shape[-1]
    x2 = x.reshape(-1, d_in)
    n = x2.shape[0]

    # Hoist the grid-invariant SAE decode out of the kernel: one (1,d_sae)x(d_sae,d_in)
    # matvec, done once in plain JAX.  W_dec never touches the kernel's VMEM.
    rec = (jnp.dot(delta.astype(jnp.float32), w_dec.astype(jnp.float32))
           + b_dec.astype(jnp.float32)).reshape(1, d_in)

    itemsize = max(jnp.dtype(x.dtype).itemsize, 4)   # budget as if f32 (in-kernel temps)
    if tm is None:
        # Largest row tile (multiple of 8, <= 1024) whose double-buffered in+out tiles
        # stay within a ~16 MiB budget -> safe on v5e/v6e (128 MiB) and v7x (64 MiB).
        budget = 16 * 1024 * 1024
        tm = max(8, min(1024, (budget // (4 * d_in * itemsize)) // 8 * 8))
    # Don't over-pad tiny inputs: shrink the tile to the 8-row-rounded row count.
    n_pad8 = ((n + 7) // 8) * 8
    tm = max(8, min(tm, n_pad8))

    # Pad rows to a multiple of tm (padded zero rows produce mu=std=0 -> harmless).
    n_padded = pl.cdiv(n, tm) * tm
    if n_padded != n:
        x2 = jnp.pad(x2, ((0, n_padded - n), (0, 0)))

    # TODO(synk): if a production d_in is not a multiple of 128, pad the feature dim in
    # the wrapper (with masked stats) for lane-dense stores; full-extent blocks are used
    # here so any d_in compiles correctly.

    kernel = (_sae_hook_ln_kernel if normalize_activations == "layer_norm"
              else _sae_hook_plain_kernel)

    out = pl.pallas_call(
        kernel,
        out_shape=jax.ShapeDtypeStruct((n_padded, d_in), x.dtype),
        grid_spec=pltpu.PrefetchScalarGridSpec(
            num_scalar_prefetch=0,
            grid=(n_padded // tm,),
            in_specs=[
                pl.BlockSpec((1, d_in), lambda i: (0, 0)),    # rec (replicated, 1 DMA)
                pl.BlockSpec((tm, d_in), lambda i: (i, 0)),   # x row tile
            ],
            out_specs=pl.BlockSpec((tm, d_in), lambda i: (i, 0)),
        ),
        compiler_params=pltpu.CompilerParams(
            dimension_semantics=("parallel",),           # v7x: shard rows across 2 TCs
            vmem_limit_bytes=48 * 1024 * 1024,           # allow the large row tile
        ),
    )(rec, x2)

    if n_padded != n:
        out = out[:n]
    return out.reshape(orig_shape)


def _reference_ln(x, delta, w_dec, b_dec):
    # mirrors the torch module formula exactly
    mu = jnp.mean(x, axis=-1, keepdims=True)
    xc = x - mu
    std = jnp.sqrt(jnp.sum(xc * xc, axis=-1, keepdims=True) / (x.shape[-1] - 1))
    rec = delta @ w_dec + b_dec
    return (rec * std + mu) + xc


def _reference_plain(x, delta, w_dec, b_dec):
    return (delta @ w_dec + b_dec) + x


if __name__ == "__main__":
    # small shapes implied by the module: x is a (batch, seq, d_in) activation,
    # delta lives in SAE feature space (d_sae), SAE decodes d_sae -> d_in.
    B, S, D_IN, D_SAE = 2, 8, 32, 64

    key = jax.random.PRNGKey(0)
    kx, kw, kb, kd = jax.random.split(key, 4)
    x = jax.random.normal(kx, (B, S, D_IN), dtype=jnp.float32)
    w_dec = jax.random.normal(kw, (D_SAE, D_IN), dtype=jnp.float32) * 0.05
    b_dec = jax.random.normal(kb, (D_IN,), dtype=jnp.float32) * 0.02
    # delta is initialized to zeros in the module; use a small non-zero value here
    # so the decode path is actually exercised.
    delta = jax.random.normal(kd, (D_SAE,), dtype=jnp.float32) * 0.1

    # layer_norm path
    out = sae_hook_forward(x, delta, w_dec, b_dec,
                           normalize_activations="layer_norm")
    out = jax.block_until_ready(out)
    ref = _reference_ln(x, delta, w_dec, b_dec)
    assert out.shape == x.shape and out.dtype == x.dtype
    assert jnp.allclose(out, ref, atol=1e-5, rtol=1e-5), "layer_norm mismatch"

    # padding path: row count not a multiple of 8 / of the tile
    x_odd = jax.random.normal(kx, (3, 5, D_IN), dtype=jnp.float32)
    out_odd = jax.block_until_ready(
        sae_hook_forward(x_odd, delta, w_dec, b_dec,
                         normalize_activations="layer_norm"))
    ref_odd = _reference_ln(x_odd, delta, w_dec, b_dec)
    assert jnp.allclose(out_odd, ref_odd, atol=1e-5, rtol=1e-5), "padded-row mismatch"

    # non-layer_norm branch
    out_p = jax.block_until_ready(
        sae_hook_forward(x, delta, w_dec, b_dec, normalize_activations="none"))
    ref_p = _reference_plain(x, delta, w_dec, b_dec)
    assert jnp.allclose(out_p, ref_p, atol=1e-5, rtol=1e-5), "plain-branch mismatch"

    # TODO(synk): the torch module mutates sae.ln_mu / sae.ln_std as a side effect;
    # Pallas kernels are functional, so those stats are computed and consumed in-kernel.
    print("KERNEL_OK")
</pallas_src>

<mosaic_0001>
module attributes {stable_mosaic.version = 11 : i64} {
  func.func @_sae_hook_ln_kernel(%arg0: i32, %arg1: memref<1x32xf32, #tpu.memory_space<vmem>>, %arg2: memref<16x32xf32, #tpu.memory_space<vmem>>, %arg3: memref<16x32xf32, #tpu.memory_space<vmem>>) attributes {dimension_semantics = [#tpu.dimension_semantics<parallel>], iteration_bounds = array<i64: 1>, scalar_prefetch = 0 : i64, scratch_operands = 0 : i64, tpu.core_type = #tpu.core_type<tc>, window_params = [{pipeline_mode = #tpu.pipeline_mode<synchronous>, transform_indices = @transform_0, window_bounds = array<i64: 1, 32>}, {transform_indices = @transform_1, window_bounds = array<i64: 16, 32>}, {transform_indices = @transform_2, window_bounds = array<i64: 16, 32>}]} {
    %c0 = arith.constant 0 : index
    %c0_0 = arith.constant 0 : index
    %0 = vector.load %arg2[%c0, %c0_0] : memref<16x32xf32, #tpu.memory_space<vmem>>, vector<16x32xf32>
    %cst = arith.constant dense<0.000000e+00> : vector<16xf32>
    %1 = vector.multi_reduction <add>, %0, %cst [1] : vector<16x32xf32> to vector<16xf32>
    %2 = vector.shape_cast %1 : vector<16xf32> to vector<16x1xf32>
    %cst_1 = arith.constant 3.125000e-02 : f32
    %3 = vector.broadcast %cst_1 : f32 to vector<16x1xf32>
    %4 = arith.mulf %2, %3 : vector<16x1xf32>
    %5 = vector.broadcast %4 : vector<16x1xf32> to vector<16x32xf32>
    %6 = arith.subf %0, %5 : vector<16x32xf32>
    %7 = arith.mulf %6, %6 : vector<16x32xf32>
    %cst_2 = arith.constant dense<0.000000e+00> : vector<16xf32>
    %8 = vector.multi_reduction <add>, %7, %cst_2 [1] : vector<16x32xf32> to vector<16xf32>
    %9 = vector.shape_cast %8 : vector<16xf32> to vector<16x1xf32>
    %cst_3 = arith.constant 0.0322580636 : f32
    %10 = vector.broadcast %cst_3 : f32 to vector<16x1xf32>
    %11 = arith.mulf %9, %10 : vector<16x1xf32>
    %12 = math.sqrt %11 : vector<16x1xf32>
    %c0_4 = arith.constant 0 : index
    %c0_5 = arith.constant 0 : index
    %13 = vector.load %arg1[%c0_4, %c0_5] : memref<1x32xf32, #tpu.memory_space<vmem>>, vector<1x32xf32>
    %14 = vector.broadcast %13 : vector<1x32xf32> to vector<16x32xf32>
    %15 = vector.broadcast %12 : vector<16x1xf32> to vector<16x32xf32>
    %16 = arith.mulf %14, %15 : vector<16x32xf32>
    %17 = arith.addf %0, %16 : vector<16x32xf32>
    %c0_6 = arith.constant 0 : index
    %c0_7 = arith.constant 0 : index
    %18 = vector.load %arg3[%c0_6, %c0_7] : memref<16x32xf32, #tpu.memory_space<vmem>>, vector<16x32xf32>
    tpu.vector_store %arg3[%c0_6, %c0_7], %17 {strides = array<i32>} : memref<16x32xf32, #tpu.memory_space<vmem>>, vector<16x32xf32>,
    return
  }
  func.func @transform_0(%arg0: i32) -> (i32, i32) {
    %c0_i32 = arith.constant 0 : i32
    %c0_i32_0 = arith.constant 0 : i32
    %c0_i32_1 = arith.constant 0 : i32
    return %c0_i32, %c0_i32_0 : i32, i32
  }
  func.func @transform_1(%arg0: i32) -> (i32, i32) {
    %c0_i32 = arith.constant 0 : i32
    %c0_i32_0 = arith.constant 0 : i32
    return %arg0, %c0_i32 : i32, i32
  }
  func.func @transform_2(%arg0: i32) -> (i32, i32) {
    %c0_i32 = arith.constant 0 : i32
    %c0_i32_0 = arith.constant 0 : i32
    return %arg0, %c0_i32 : i32, i32
  }
}

</mosaic_0001>

<bundles_post_ra>
// kernel: tpu_custom_call.1
= control target key start
LH: loop header
LB: loop body
LE: loop exit
PB: predicated region body
PF: predicated region fallthrough
CT: control target
= control target key end

     0   :  { %7 = vsyncpa [#allocation3], 0  ;;  %s263_s0 = inlined_call_operand.hbm [shape: f32[1,32], index: 0, kind: input, shape index: {}]   ;;  %s264_s1 = inlined_call_operand.hbm [shape: f32[16,32], index: 1, kind: input, shape index: {}]   ;;  %s265_s2 = inlined_call_operand.hbm [shape: f32[16,32], index: 2, kind: output, shape index: {}]  }
   0x1   :  { %8 = vsyncpa [#allocation6], 0 }
   0x2   :  { %9 = vsyncpa [#allocation4], 0  ;;  %s188_s9 = smov [#allocation2]   ;;  %s189_s11 = smov [#allocation5]  }
   0x3   :  { %s16_s10 = sshll.u32 %s188_s9, 4  ;;  %s25_s12 = sshll.u32 %s189_s11, 4  ;;  %s17_s10 = int_to_ptr.vmem [resolvable:$true] %s16_s10  ;;  %s208_s12 = int_to_ptr.vmem [resolvable:$true] %s25_s12 }
   0x4   :  { %s116_s15 = scalar_lea.hbm %s263_s0, 16 }
   0x5   :  { %p117_p0 = scmp.ne.s32.totalorder %s263_s0, %s116_s15  ;;  %p120_p1 = scmp.lt.u32.totalorder %s116_s15, %s263_s0 }
   0x7   :  { %p122_p2 = pnand %p120_p1, %p117_p0 }
   0x9   :  { %125 = shalt.err (!%p122_p2)
}
   0xa   :  { %s126_s20 = scalar_lea.vmem %s17_s10, 16  ;;  %s130_s21 = scalar_lea.vmem %s17_s10, 32 }
   0xb   :  { %p127_p3 = scmp.ne.s32.totalorder %s17_s10, %s126_s20  ;;  %p131_p4 = scmp.lt.s32.totalorder %s17_s10, %s17_s10 }
   0xc   :  { %p132_p5 = scmp.lt.s32.totalorder %s130_s21, %s126_s20 }
   0xe   :  { %p133_p6 = por %p132_p5, %p131_p4 }
  0x10   :  { %p134_p7 = pnand %p133_p6, %p127_p3 }
  0x12   :  { %137 = shalt.err (!%p134_p7)
}
  0x13   :  { %19 = dma.hbm_to_vmem [thread:$0]  %s263_s0, 16, %s17_s10, [#allocation3]  }
  0x14   :  { %s138_s26 = scalar_lea.hbm %s264_s1, 256 }
  0x15   :  { %p139_p8 = scmp.ne.s32.totalorder %s264_s1, %s138_s26  ;;  %p142_p9 = scmp.lt.u32.totalorder %s138_s26, %s264_s1 }
  0x17   :  { %p144_p10 = pnand %p142_p9, %p139_p8 }
  0x19   :  { %147 = shalt.err (!%p144_p10)
}
  0x1a   :  { %s148_s3 = scalar_lea.vmem %s208_s12, 256  ;;  %p153_p12 = scmp.lt.s32.totalorder %s208_s12, %s208_s12 }
  0x1b   :  { %p149_p11 = scmp.ne.s32.totalorder %s208_s12, %s148_s3  ;;  %p154_p13 = scmp.lt.s32.totalorder %s148_s3, %s148_s3 }
  0x1d   :  { %p155_p0 = por %p154_p13, %p153_p12 }
  0x1f   :  { %p156_p1 = pnand %p155_p0, %p149_p11 }
  0x21   :  { %159 = shalt.err (!%p156_p1)
}
  0x22   :  { %s190_s0 = smov 128   ;;  %s191_s4 = smov 8  }
  0x23   :  { %31 = dma.hbm_to_vmem [thread:$0]  %s264_s1, 256, %s208_s12, [#allocation6], %s190_s0, %s190_s0, %s191_s4  }
  0x24   :  { %182 = dma.done.wait [#allocation3], 16  }
  0x25   :  { %183 = vsyncadd [#allocation3], 4294967280 }
  0x26   :  { %184 = dma.done.wait [#allocation6], 256  }
  0x27   :  { %185 = vsyncadd [#allocation6], 4294967040  ;;  %vm40_vm0 = vcmask 261120   ;;  %v38_v0 = vld [vmem:[#allocation5] sm:$0xff]  ;;  %v39_v1 = vld [vmem:[#allocation5 + $0x8] sm:$0xff]  ;;  %s192_s1 = smov [#allocation7]  }
  0x28   :  { %v41_v2 = vsel %vm40_vm0, %v38_v0, 0.0  ;;  %v44_v3 = vsel %vm40_vm0, %v39_v1, 0.0  ;;  %v106_v21 = vld [vmem:[#allocation2] ss:$0 sm:$0xff]  ;;  %s93_s7 = sshll.u32 %s192_s1, 4  ;;  %s94_s7 = int_to_ptr.vmem [resolvable:$true] %s93_s7 }
  0x29   :  { %42 = vadd.xlane.f32.xlu0 %v41_v2  ;;  %s160_s8 = scalar_lea.vmem %s94_s7, 256  ;;  %p165_p3 = scmp.lt.s32.totalorder %s94_s7, %s94_s7 }
  0x2a   :  { %p161_p2 = scmp.ne.s32.totalorder %s94_s7, %s160_s8  ;;  %p166_p4 = scmp.lt.s32.totalorder %s160_s8, %s160_s8 }
  0x2c   :  { %p167_p5 = por %p166_p4, %p165_p3 }
  0x2d   :  { %45 = vadd.xlane.f32.xlu0 %v44_v3 }
  0x2e   :  { %p168_p6 = pnand %p167_p5, %p161_p2 }
  0xb6   :  { %v43_v4 = vpop.xlane.xlu0 %42 }
  0xb7   :  { %v47_v5 = vmul.f32 0.03125, %v43_v4 }
  0xb9   :  { %v49_v6 = vsub.f32 %v38_v0, %v47_v5 }
  0xba   :  { %v46_v7 = vpop.xlane.xlu0 %45 }
  0xbb   :  { %v48_v8 = vmul.f32 0.03125, %v46_v7  ;;  %v51_v9 = vmul.f32 %v49_v6, %v49_v6 }
  0xbd   :  { %v50_v10 = vsub.f32 %v39_v1, %v48_v8  ;;  %v53_v11 = vsel %vm40_vm0, %v51_v9, 0.0 }
  0xbe   :  { %54 = vadd.xlane.f32.xlu1 %v53_v11 }
  0xbf   :  { %v52_v12 = vmul.f32 %v50_v10, %v50_v10 }
  0xc1   :  { %v56_v13 = vsel %vm40_vm0, %v52_v12, 0.0 }
  0xc2   :  { %57 = vadd.xlane.f32.xlu1 %v56_v13 }
 0x14b   :  { %v55_v14 = vpop.xlane.xlu1 %54 }
 0x14c   :  { %v59_v15 = vmul.f32 0.032258064, %v55_v14 }
 0x14e   :  { %112 = vrsqrt.f32 %v59_v15  ;;  %vm63_vm1 = vcmp.eq.f32.partialorder %v59_v15, inf  ;;  %v66_v20 = vand.u32 2147483648, %v59_v15  ;;  %vm65_vm2 = vcmp.eq.f32.partialorder %v59_v15, 0.0 }
 0x14f   :  { %v58_v16 = vpop.xlane.xlu1 %57 }
 0x150   :  { %v60_v17 = vmul.f32 0.032258064, %v58_v16 }
 0x152   :  { %114 = vrsqrt.f32 %v60_v17  ;;  %vm70_vm3 = vcmp.eq.f32.partialorder %v60_v17, inf  ;;  %v73_v27 = vand.u32 2147483648, %v60_v17  ;;  %vm72_vm4 = vcmp.eq.f32.partialorder %v60_v17, 0.0 }
 0x158   :  { %v113_v18 = vpop.eup %112 }
 0x159   :  { %v62_v19 = vmul.f32 %v113_v18, %v59_v15 }
 0x15b   :  { %v64_v22 = vsel %vm63_vm1, %v59_v15, %v62_v19 }
 0x15c   :  { %v115_v23 = vpop.eup %114  ;;  %v67_v24 = vsel %vm65_vm2, %v66_v20, %v64_v22 }
 0x15d   :  { %v69_v25 = vmul.f32 %v115_v23, %v60_v17  ;;  %v82_v26 = vmul.f32 %v106_v21, %v67_v24 }
 0x15f   :  { %v71_v28 = vsel %vm70_vm3, %v60_v17, %v69_v25  ;;  %v84_v29 = vadd.f32 %v82_v26, %v38_v0 }
 0x160   :  { %v74_v30 = vsel %vm72_vm4, %v73_v27, %v71_v28 }
 0x161   :  { %v83_v31 = vmul.f32 %v106_v21, %v74_v30  ;;  %86 = vst.msk [vmem:[#allocation7] sm:$0xff] %vm40_vm0, %v84_v29 }
 0x163   :  { %v85_v32 = vadd.f32 %v83_v31, %v39_v1 }
 0x165   :  { %87 = vst.msk [vmem:[#allocation7 + $0x8] sm:$0xff] %vm40_vm0, %v85_v32 }
 0x166   :  { %171 = shalt.err (!%p168_p6)
}
 0x167   :  { %s172_s11 = scalar_lea.hbm %s265_s2, 256 }
 0x168   :  { %p173_p7 = scmp.ne.s32.totalorder %s265_s2, %s172_s11  ;;  %p176_p8 = scmp.lt.u32.totalorder %s172_s11, %s265_s2 }
 0x16a   :  { %p178_p9 = pnand %p176_p8, %p173_p7 }
 0x16c   :  { %181 = shalt.err (!%p178_p9)
}
 0x16d   :  { %99 = dma.vmem_to_hbm [thread:$0]  %s94_s7, 256, %s265_s2, [#allocation4], %s190_s0, %s190_s0, %s191_s4  }
 0x16e   :  { %186 = dma.done.wait [#allocation4], 256  }
 0x16f   :  { %187 = vsyncadd [#allocation4], 4294967040 }
 0x170   :  { %103 = vsyncpa [#allocation3], 1 }
 0x171   :  { %104 = vsyncpa [#allocation6], 1 }
 0x172   :  { %105 = vsyncpa [#allocation4], 1 }

</bundles_post_ra>
